<compile_context>
chip_gen: v7x
topology: tpu7x:2x2x1
jax: 0.10.0
libtpu: 0.0.40
codegen_flags: <defaults>
</compile_context>

<pallas_src>
import functools

import jax
import jax.numpy as jnp
from jax.experimental import pallas as pl
from jax.experimental.pallas import tpu as pltpu

LANE = 128


def _round_up(x, m):
    return (x + m - 1) // m * m


def _attention_kernel(hidden_ref, enc_ref, wh_ref, we_ref, hb_ref, v_ref,
                      wo_ref, ob_ref, attn_ref, out_ref, *, s_valid):
    f32 = jnp.float32
    tb, sp, ep = enc_ref.shape

    # Decoder-hidden projection + bias for the whole tile (one MXU call, f32 acc).
    pre_h = jnp.dot(hidden_ref[...], wh_ref[...],
                    preferred_element_type=f32) + hb_ref[...]          # (tb, Dp)

    # Encoder projection: flatten the batch tile (free reshape, Sp % sublane == 0)
    # and do ONE (tb*Sp, Ep) @ (Ep, Dp) MXU matmul.
    enc = enc_ref[...]                                                 # (tb, Sp, Ep)
    pre_e = jnp.dot(enc.reshape(tb * sp, ep), we_ref[...],
                    preferred_element_type=f32)                        # (tb*Sp, Dp)
    energy = jnp.tanh(pre_e.reshape(tb, sp, pre_e.shape[-1])
                      + pre_h[:, None, :])                             # (tb, Sp, Dp) f32

    # scores = v . energy : VPU broadcast-multiply + XLU lane reduce (D is tiny).
    scores = jnp.sum(energy * v_ref[...][None], axis=-1)               # (tb, Sp) f32
    if s_valid < sp:                                                   # mask padded src rows
        lane_idx = jax.lax.broadcasted_iota(jnp.int32, scores.shape, 1)
        scores = jnp.where(lane_idx < s_valid, scores, f32(-1e30))

    # Numerically stable softmax over src_len; exact reciprocal (cheap, keeps tol).
    m = jnp.max(scores, axis=1, keepdims=True)
    p = jnp.exp(scores - m)
    attn = p / jnp.sum(p, axis=1, keepdims=True)                       # (tb, Sp) f32

    # Weighted context: f32 probs * enc, sublane reduce over src -> (tb, Ep).
    weighted = jnp.sum(attn[:, :, None] * enc, axis=1)                 # (tb, Ep) f32

    # Single batched output projection (tb, Ep) @ (Ep, Op) on the MXU.
    out = jnp.dot(weighted.astype(wo_ref.dtype), wo_ref[...],
                  preferred_element_type=f32) + ob_ref[...]            # (tb, Op) f32

    attn_ref[...] = attn.astype(attn_ref.dtype)
    out_ref[...] = out.astype(out_ref.dtype)


def prepare_attention_operands(params, encoder_outputs, *,
                               matmul_dtype=jnp.bfloat16, batch_tile=8,
                               vmem_limit_bytes=64 * 1024 * 1024):
    """Pad/cast the per-sequence invariants ONCE (hoisted out of the decode loop)."""
    B, S, E2 = encoder_outputs.shape
    D = params["attn_wh"].shape[0]
    O = params["out_w"].shape[1]
    f32 = jnp.float32

    sub = 32 // jnp.dtype(matmul_dtype).itemsize        # sublane multiple: 8 f32 / 16 bf16
    Dp, Ep, Op = (_round_up(d, LANE) for d in (D, E2, O))
    Sp = _round_up(S, sub)                               # S is a sublane axis -> no 128 pad
    Bp = _round_up(B, batch_tile)

    def pad2(a, r, c):
        return jnp.pad(a, ((0, r - a.shape[0]), (0, c - a.shape[1])))

    ops = {
        "enc": jnp.pad(encoder_outputs.astype(matmul_dtype),
                       ((0, Bp - B), (0, Sp - S), (0, Ep - E2))),
        "wh": pad2(params["attn_wh"].astype(f32), Dp, Dp),   # paired with f32 hidden
        "we": pad2(params["attn_we"].astype(matmul_dtype), Ep, Dp),
        "hb": pad2(params["attn_b"].astype(f32), 1, Dp),
        "v": pad2(params["v"].astype(f32), 1, Dp),
        "wo": pad2(params["out_w"].astype(matmul_dtype), Ep, Op),
        "ob": pad2(params["out_b"].astype(f32), 1, Op),
    }
    dims = dict(B=B, S=S, D=D, O=O, Bp=Bp, Sp=Sp, Dp=Dp, Ep=Ep, Op=Op,
                batch_tile=batch_tile, vmem_limit_bytes=vmem_limit_bytes)
    return ops, dims


def attention_step(hidden, ops, dims):
    """hidden: (B, D) decoder hidden -> (attn (B, S), out (B, O))."""
    B, S, D, O = dims["B"], dims["S"], dims["D"], dims["O"]
    Bp, Sp, Dp, Ep, Op = dims["Bp"], dims["Sp"], dims["Dp"], dims["Ep"], dims["Op"]
    tb = dims["batch_tile"]
    f32 = jnp.float32

    # Only the per-step operand (hidden) is padded here; everything else is prepared.
    hidden_p = jnp.pad(hidden.astype(f32), ((0, Bp - B), (0, Dp - D)))

    kernel = functools.partial(_attention_kernel, s_valid=S)

    def resident(shape):
        return pl.BlockSpec(shape, lambda i: (0,) * len(shape))

    attn_p, out_p = pl.pallas_call(
        kernel,
        out_shape=(jax.ShapeDtypeStruct((Bp, Sp), f32),
                   jax.ShapeDtypeStruct((Bp, Op), f32)),
        grid_spec=pltpu.PrefetchScalarGridSpec(
            num_scalar_prefetch=0,
            grid=(Bp // tb,),
            in_specs=[
                pl.BlockSpec((tb, Dp), lambda i: (i, 0)),          # hidden
                pl.BlockSpec((tb, Sp, Ep), lambda i: (i, 0, 0)),   # encoder outputs
                resident((Dp, Dp)),   # W_h
                resident((Ep, Dp)),   # W_e
                resident((1, Dp)),    # attn bias
                resident((1, Dp)),    # v
                resident((Ep, Op)),   # W_out
                resident((1, Op)),    # out bias
            ],
            out_specs=(
                pl.BlockSpec((tb, Sp), lambda i: (i, 0)),
                pl.BlockSpec((tb, Op), lambda i: (i, 0)),
            ),
        ),
        compiler_params=pltpu.CompilerParams(
            dimension_semantics=("parallel",),
            vmem_limit_bytes=dims["vmem_limit_bytes"],
        ),
    )(hidden_p, ops["enc"], ops["wh"], ops["we"], ops["hb"], ops["v"],
      ops["wo"], ops["ob"])

    return attn_p[:B, :S], out_p[:B, :O]


def init_params(key, enc_hid_dim, dec_hid_dim, output_size):
    E2 = 2 * enc_hid_dim
    D = dec_hid_dim
    ks = jax.random.split(key, 6)
    k_attn = 1.0 / jnp.sqrt(E2 + D)
    k_out = 1.0 / jnp.sqrt(E2)
    # attn Linear weight split into hidden-part (D rows) and encoder-part (2E rows),
    # stored already-transposed as (in, out) so the kernel does x @ W.
    return {
        "attn_wh": jax.random.uniform(ks[0], (D, D), jnp.float32, -k_attn, k_attn),
        "attn_we": jax.random.uniform(ks[1], (E2, D), jnp.float32, -k_attn, k_attn),
        "attn_b": jax.random.uniform(ks[2], (1, D), jnp.float32, -k_attn, k_attn),
        "v": jax.random.uniform(ks[3], (1, D), jnp.float32, 0.0, 1.0),
        "out_w": jax.random.uniform(ks[4], (E2, output_size), jnp.float32, -k_out, k_out),
        "out_b": jax.random.uniform(ks[5], (1, output_size), jnp.float32, -k_out, k_out),
    }


def attention_reference(hidden, encoder_outputs, params):
    # Pure-JAX reference mirroring the PyTorch forward, at f32 matmul precision.
    with jax.default_matmul_precision("float32"):
        B, S, _ = encoder_outputs.shape
        h_rep = jnp.repeat(hidden[:, None, :], S, axis=1)
        cat = jnp.concatenate([h_rep, encoder_outputs], axis=2)
        w_full = jnp.concatenate([params["attn_wh"], params["attn_we"]], axis=0)
        energy = jnp.tanh(cat @ w_full + params["attn_b"][0])
        scores = jnp.einsum("bsd,d->bs", energy, params["v"][0])
        attn = jax.nn.softmax(scores, axis=1)
        weighted = jnp.einsum("bs,bse->be", attn, encoder_outputs)
        out = weighted @ params["out_w"] + params["out_b"][0]
        return attn, out


if __name__ == "__main__":
    enc_hid_dim = 8
    dec_hid_dim = 16
    output_size = 4

    key = jax.random.PRNGKey(0)
    k_p, k_h, k_e, k_h2, k_e2 = jax.random.split(key, 5)
    params = init_params(k_p, enc_hid_dim, dec_hid_dim, output_size)

    # --- run 1: f32 MXU operands, two decode steps reusing the prepared operands
    batch, src_len = 2, 8
    enc_out = jax.random.normal(k_e, (batch, src_len, 2 * enc_hid_dim), jnp.float32)
    hiddens = jax.random.normal(k_h, (2, batch, dec_hid_dim), jnp.float32)

    ops, dims = prepare_attention_operands(params, enc_out,
                                           matmul_dtype=jnp.float32, batch_tile=8)
    for t in range(2):
        attn, out = attention_step(hiddens[t], ops, dims)
        jax.block_until_ready((attn, out))
        r_attn, r_out = attention_reference(hiddens[t], enc_out, params)
        assert jnp.allclose(attn, r_attn, atol=1e-2, rtol=1e-2)
        assert jnp.allclose(out, r_out, atol=1e-2, rtol=1e-2)

    # --- run 2: bf16 MXU operands (v6e/v7x path), batch=16 -> 2 parallel grid steps
    batch2, src_len2 = 16, 8
    enc_out2 = jax.random.normal(k_e2, (batch2, src_len2, 2 * enc_hid_dim), jnp.float32)
    hidden2 = jax.random.normal(k_h2, (batch2, dec_hid_dim), jnp.float32)

    ops2, dims2 = prepare_attention_operands(params, enc_out2,
                                             matmul_dtype=jnp.bfloat16, batch_tile=8)
    attn2, out2 = attention_step(hidden2, ops2, dims2)
    jax.block_until_ready((attn2, out2))
    r_attn2, r_out2 = attention_reference(hidden2, enc_out2, params)
    assert jnp.allclose(attn2, r_attn2, atol=5e-2, rtol=5e-2)
    assert jnp.allclose(out2, r_out2, atol=5e-2, rtol=5e-2)

    print("KERNEL_OK")
</pallas_src>

<mosaic_0001>
module attributes {stable_mosaic.version = 11 : i64} {
  func.func @_attention_kernel(%arg0: i32, %arg1: memref<8x128xf32, #tpu.memory_space<vmem>>, %arg2: memref<8x8x128xf32, #tpu.memory_space<vmem>>, %arg3: memref<128x128xf32, #tpu.memory_space<vmem>>, %arg4: memref<128x128xf32, #tpu.memory_space<vmem>>, %arg5: memref<1x128xf32, #tpu.memory_space<vmem>>, %arg6: memref<1x128xf32, #tpu.memory_space<vmem>>, %arg7: memref<128x128xf32, #tpu.memory_space<vmem>>, %arg8: memref<1x128xf32, #tpu.memory_space<vmem>>, %arg9: memref<8x8xf32, #tpu.memory_space<vmem>>, %arg10: memref<8x128xf32, #tpu.memory_space<vmem>>) attributes {dimension_semantics = [#tpu.dimension_semantics<parallel>], iteration_bounds = array<i64: 1>, scalar_prefetch = 0 : i64, scratch_operands = 0 : i64, tpu.core_type = #tpu.core_type<tc>, window_params = [{transform_indices = @transform_0, window_bounds = array<i64: 8, 128>}, {transform_indices = @transform_1, window_bounds = array<i64: 8, 8, 128>}, {pipeline_mode = #tpu.pipeline_mode<synchronous>, transform_indices = @transform_2, window_bounds = array<i64: 128, 128>}, {pipeline_mode = #tpu.pipeline_mode<synchronous>, transform_indices = @transform_3, window_bounds = array<i64: 128, 128>}, {pipeline_mode = #tpu.pipeline_mode<synchronous>, transform_indices = @transform_4, window_bounds = array<i64: 1, 128>}, {pipeline_mode = #tpu.pipeline_mode<synchronous>, transform_indices = @transform_5, window_bounds = array<i64: 1, 128>}, {pipeline_mode = #tpu.pipeline_mode<synchronous>, transform_indices = @transform_6, window_bounds = array<i64: 128, 128>}, {pipeline_mode = #tpu.pipeline_mode<synchronous>, transform_indices = @transform_7, window_bounds = array<i64: 1, 128>}, {transform_indices = @transform_8, window_bounds = array<i64: 8, 8>}, {transform_indices = @transform_9, window_bounds = array<i64: 8, 128>}]} {
    %c0 = arith.constant 0 : index
    %c0_0 = arith.constant 0 : index
    %0 = vector.load %arg1[%c0, %c0_0] : memref<8x128xf32, #tpu.memory_space<vmem>>, vector<8x128xf32>
    %c0_1 = arith.constant 0 : index
    %c0_2 = arith.constant 0 : index
    %1 = vector.load %arg3[%c0_1, %c0_2] : memref<128x128xf32, #tpu.memory_space<vmem>>, vector<128x128xf32>
    %cst = arith.constant dense<0.000000e+00> : vector<8x128xf32>
    %2 = tpu.matmul %0, %1, %cst {dimension_numbers = #tpu.dot_dimension_numbers<[1], [0], [0], [1], [0, 0, 1, 1], [], []>} : vector<8x128xf32>, vector<128x128xf32>, vector<8x128xf32> -> vector<8x128xf32>
    %c0_3 = arith.constant 0 : index
    %c0_4 = arith.constant 0 : index
    %3 = vector.load %arg5[%c0_3, %c0_4] : memref<1x128xf32, #tpu.memory_space<vmem>>, vector<1x128xf32>
    %4 = vector.broadcast %3 : vector<1x128xf32> to vector<8x128xf32>
    %5 = arith.addf %2, %4 : vector<8x128xf32>
    %c0_5 = arith.constant 0 : index
    %c0_6 = arith.constant 0 : index
    %c0_7 = arith.constant 0 : index
    %6 = vector.load %arg2[%c0_5, %c0_6, %c0_7] : memref<8x8x128xf32, #tpu.memory_space<vmem>>, vector<8x8x128xf32>
    %7 = vector.shape_cast %6 : vector<8x8x128xf32> to vector<64x128xf32>
    %c0_8 = arith.constant 0 : index
    %c0_9 = arith.constant 0 : index
    %8 = vector.load %arg4[%c0_8, %c0_9] : memref<128x128xf32, #tpu.memory_space<vmem>>, vector<128x128xf32>
    %cst_10 = arith.constant dense<0.000000e+00> : vector<64x128xf32>
    %9 = tpu.matmul %7, %8, %cst_10 {dimension_numbers = #tpu.dot_dimension_numbers<[1], [0], [0], [1], [0, 0, 1, 1], [], []>} : vector<64x128xf32>, vector<128x128xf32>, vector<64x128xf32> -> vector<64x128xf32>
    %10 = vector.shape_cast %9 : vector<64x128xf32> to vector<8x8x128xf32>
    %11 = vector.shape_cast %5 : vector<8x128xf32> to vector<8x1x128xf32>
    %12 = vector.broadcast %11 : vector<8x1x128xf32> to vector<8x8x128xf32>
    %13 = arith.addf %10, %12 : vector<8x8x128xf32>
    %14 = math.tanh %13 : vector<8x8x128xf32>
    %c0_11 = arith.constant 0 : index
    %c0_12 = arith.constant 0 : index
    %15 = vector.load %arg6[%c0_11, %c0_12] : memref<1x128xf32, #tpu.memory_space<vmem>>, vector<1x128xf32>
    %16 = vector.shape_cast %15 : vector<1x128xf32> to vector<1x1x128xf32>
    %17 = vector.broadcast %16 : vector<1x1x128xf32> to vector<8x8x128xf32>
    %18 = arith.mulf %14, %17 : vector<8x8x128xf32>
    %cst_13 = arith.constant dense<0.000000e+00> : vector<8x8xf32>
    %19 = vector.multi_reduction <add>, %18, %cst_13 [2] : vector<8x8x128xf32> to vector<8x8xf32>
    %cst_14 = arith.constant dense<0xFF800000> : vector<8xf32>
    %20 = vector.multi_reduction <maximumf>, %19, %cst_14 [1] : vector<8x8xf32> to vector<8xf32>
    %21 = vector.shape_cast %20 : vector<8xf32> to vector<8x1xf32>
    %22 = vector.broadcast %21 : vector<8x1xf32> to vector<8x8xf32>
    %23 = arith.subf %19, %22 : vector<8x8xf32>
    %24 = math.exp %23 : vector<8x8xf32>
    %cst_15 = arith.constant dense<0.000000e+00> : vector<8xf32>
    %25 = vector.multi_reduction <add>, %24, %cst_15 [1] : vector<8x8xf32> to vector<8xf32>
    %26 = vector.shape_cast %25 : vector<8xf32> to vector<8x1xf32>
    %27 = vector.broadcast %26 : vector<8x1xf32> to vector<8x8xf32>
    %28 = arith.divf %24, %27 : vector<8x8xf32>
    %29 = vector.shape_cast %28 : vector<8x8xf32> to vector<8x8x1xf32>
    %30 = vector.broadcast %29 : vector<8x8x1xf32> to vector<8x8x128xf32>
    %31 = arith.mulf %30, %6 : vector<8x8x128xf32>
    %cst_16 = arith.constant dense<0.000000e+00> : vector<8x128xf32>
    %32 = vector.multi_reduction <add>, %31, %cst_16 [1] : vector<8x8x128xf32> to vector<8x128xf32>
    %c0_17 = arith.constant 0 : index
    %c0_18 = arith.constant 0 : index
    %33 = vector.load %arg7[%c0_17, %c0_18] : memref<128x128xf32, #tpu.memory_space<vmem>>, vector<128x128xf32>
    %cst_19 = arith.constant dense<0.000000e+00> : vector<8x128xf32>
    %34 = tpu.matmul %32, %33, %cst_19 {dimension_numbers = #tpu.dot_dimension_numbers<[1], [0], [0], [1], [0, 0, 1, 1], [], []>} : vector<8x128xf32>, vector<128x128xf32>, vector<8x128xf32> -> vector<8x128xf32>
    %c0_20 = arith.constant 0 : index
    %c0_21 = arith.constant 0 : index
    %35 = vector.load %arg8[%c0_20, %c0_21] : memref<1x128xf32, #tpu.memory_space<vmem>>, vector<1x128xf32>
    %36 = vector.broadcast %35 : vector<1x128xf32> to vector<8x128xf32>
    %37 = arith.addf %34, %36 : vector<8x128xf32>
    %c0_22 = arith.constant 0 : index
    %c0_23 = arith.constant 0 : index
    %38 = vector.load %arg9[%c0_22, %c0_23] : memref<8x8xf32, #tpu.memory_space<vmem>>, vector<8x8xf32>
    tpu.vector_store %arg9[%c0_22, %c0_23], %28 {strides = array<i32>} : memref<8x8xf32, #tpu.memory_space<vmem>>, vector<8x8xf32>,
    %c0_24 = arith.constant 0 : index
    %c0_25 = arith.constant 0 : index
    %39 = vector.load %arg10[%c0_24, %c0_25] : memref<8x128xf32, #tpu.memory_space<vmem>>, vector<8x128xf32>
    tpu.vector_store %arg10[%c0_24, %c0_25], %37 {strides = array<i32>} : memref<8x128xf32, #tpu.memory_space<vmem>>, vector<8x128xf32>,
    return
  }
  func.func @transform_0(%arg0: i32) -> (i32, i32) {
    %c0_i32 = arith.constant 0 : i32
    %c0_i32_0 = arith.constant 0 : i32
    return %arg0, %c0_i32 : i32, i32
  }
  func.func @transform_1(%arg0: i32) -> (i32, i32, i32) {
    %c0_i32 = arith.constant 0 : i32
    %c0_i32_0 = arith.constant 0 : i32
    %c0_i32_1 = arith.constant 0 : i32
    return %arg0, %c0_i32, %c0_i32_0 : i32, i32, i32
  }
  func.func @transform_2(%arg0: i32) -> (i32, i32) {
    %c0_i32 = arith.constant 0 : i32
    %c0_i32_0 = arith.constant 0 : i32
    %c0_i32_1 = arith.constant 0 : i32
    return %c0_i32, %c0_i32_0 : i32, i32
  }
  func.func @transform_3(%arg0: i32) -> (i32, i32) {
    %c0_i32 = arith.constant 0 : i32
    %c0_i32_0 = arith.constant 0 : i32
    %c0_i32_1 = arith.constant 0 : i32
    return %c0_i32, %c0_i32_0 : i32, i32
  }
  func.func @transform_4(%arg0: i32) -> (i32, i32) {
    %c0_i32 = arith.constant 0 : i32
    %c0_i32_0 = arith.constant 0 : i32
    %c0_i32_1 = arith.constant 0 : i32
    return %c0_i32, %c0_i32_0 : i32, i32
  }
  func.func @transform_5(%arg0: i32) -> (i32, i32) {
    %c0_i32 = arith.constant 0 : i32
    %c0_i32_0 = arith.constant 0 : i32
    %c0_i32_1 = arith.constant 0 : i32
    return %c0_i32, %c0_i32_0 : i32, i32
  }
  func.func @transform_6(%arg0: i32) -> (i32, i32) {
    %c0_i32 = arith.constant 0 : i32
    %c0_i32_0 = arith.constant 0 : i32
    %c0_i32_1 = arith.constant 0 : i32
    return %c0_i32, %c0_i32_0 : i32, i32
  }
  func.func @transform_7(%arg0: i32) -> (i32, i32) {
    %c0_i32 = arith.constant 0 : i32
    %c0_i32_0 = arith.constant 0 : i32
    %c0_i32_1 = arith.constant 0 : i32
    return %c0_i32, %c0_i32_0 : i32, i32
  }
  func.func @transform_8(%arg0: i32) -> (i32, i32) {
    %c0_i32 = arith.constant 0 : i32
    %c0_i32_0 = arith.constant 0 : i32
    return %arg0, %c0_i32 : i32, i32
  }
  func.func @transform_9(%arg0: i32) -> (i32, i32) {
    %c0_i32 = arith.constant 0 : i32
    %c0_i32_0 = arith.constant 0 : i32
    return %arg0, %c0_i32 : i32, i32
  }
}

</mosaic_0001>

<bundles_post_ra>
// kernel: tpu_custom_call.1
= control target key start
LH: loop header
LB: loop body
LE: loop exit
PB: predicated region body
PF: predicated region fallthrough
CT: control target
= control target key end

     0   :  { %15 = vsyncpa [#allocation3], 0  ;;  %s1978_s0 = inlined_call_operand.hbm [shape: f32[8,128], index: 0, kind: input, shape index: {}]   ;;  %s1979_s1 = inlined_call_operand.hbm [shape: f32[8,8,128], index: 1, kind: input, shape index: {}]   ;;  %s1980_s2 = inlined_call_operand.hbm [shape: f32[128,128], index: 2, kind: input, shape index: {}]   ;;  %s1981_s3 = inlined_call_operand.hbm [shape: f32[128,128], index: 3, kind: input, shape index: {}]   ;;  %s1982_s4 = inlined_call_operand.hbm [shape: f32[1,128], index: 4, kind: input, shape index: {}]   ;;  %s1983_s5 = inlined_call_operand.hbm [shape: f32[1,128], index: 5, kind: input, shape index: {}]   ;;  %s1984_s6 = inlined_call_operand.hbm [shape: f32[128,128], index: 6, kind: input, shape index: {}]   ;;  %s1985_s7 = inlined_call_operand.hbm [shape: f32[1,128], index: 7, kind: input, shape index: {}]   ;;  %s1986_s8 = inlined_call_operand.hbm [shape: f32[8,8], index: 8, kind: output, shape index: {0}]   ;;  %s1987_s9 = inlined_call_operand.hbm [shape: f32[8,128], index: 9, kind: output, shape index: {1}]  }
   0x1   :  { %16 = vsyncpa [#allocation6], 0 }
   0x2   :  { %17 = vsyncpa [#allocation9], 0 }
   0x3   :  { %18 = vsyncpa [#allocation12], 0 }
   0x4   :  { %19 = vsyncpa [#allocation15], 0 }
   0x5   :  { %20 = vsyncpa [#allocation4], 0 }
   0x6   :  { %21 = vsyncpa [#allocation18], 0  ;;  %s1588_s30 = smov [#allocation5]   ;;  %s1354_s13 = scalar_lea.hbm %s1979_s1, 1024 }
   0x7   :  { %s37_s10 = sshll.u32 %s1588_s30, 4  ;;  %p1355_p0 = scmp.ne.s32.totalorder %s1979_s1, %s1354_s13  ;;  %s38_s10 = int_to_ptr.vmem [resolvable:$true] %s37_s10 }
   0x8   :  { %p1358_p1 = scmp.lt.u32.totalorder %s1354_s13, %s1979_s1 }
   0xa   :  { %p1360_p2 = pnand %p1358_p1, %p1355_p0 }
   0xc   :  { %1363 = shalt.err (!%p1360_p2)
}
   0xd   :  { %s1364_s18 = scalar_lea.vmem %s38_s10, 1024  ;;  %p1369_p4 = scmp.lt.s32.totalorder %s38_s10, %s38_s10 }
   0xe   :  { %p1365_p3 = scmp.ne.s32.totalorder %s38_s10, %s1364_s18  ;;  %p1370_p5 = scmp.lt.s32.totalorder %s1364_s18, %s1364_s18 }
  0x10   :  { %p1371_p6 = por %p1370_p5, %p1369_p4 }
  0x12   :  { %p1372_p7 = pnand %p1371_p6, %p1365_p3 }
  0x14   :  { %1375 = shalt.err (!%p1372_p7)
}
  0x15   :  { %s1589_s19 = smov 128   ;;  %s1590_s20 = smov 8  }
  0x16   :  { %43 = dma.hbm_to_vmem [thread:$0]  %s1979_s1, 1024, %s38_s10, [#allocation6], %s1589_s19, %s1589_s19, %s1590_s20  }
  0x17   :  { %s1591_s23 = smov [#allocation8]   ;;  %s1592_s25 = smov [#allocation11]  }
  0x18   :  { %s61_s24 = sshll.u32 %s1591_s23, 4  ;;  %s84_s26 = sshll.u32 %s1592_s25, 4  ;;  %s62_s24 = int_to_ptr.vmem [resolvable:$true] %s61_s24  ;;  %s85_s26 = int_to_ptr.vmem [resolvable:$true] %s84_s26 }
  0x19   :  { %s1376_s29 = scalar_lea.hbm %s1981_s3, 2048 }
  0x1a   :  { %p1377_p8 = scmp.ne.s32.totalorder %s1981_s3, %s1376_s29  ;;  %p1380_p9 = scmp.lt.u32.totalorder %s1376_s29, %s1981_s3 }
  0x1c   :  { %p1382_p10 = pnand %p1380_p9, %p1377_p8 }
  0x1e   :  { %1385 = shalt.err (!%p1382_p10)
}
  0x1f   :  { %s1386_s1 = scalar_lea.vmem %s62_s24, 2048  ;;  %p1391_p12 = scmp.lt.s32.totalorder %s62_s24, %s62_s24 }
  0x20   :  { %p1387_p11 = scmp.ne.s32.totalorder %s62_s24, %s1386_s1  ;;  %p1392_p13 = scmp.lt.s32.totalorder %s1386_s1, %s1386_s1 }
  0x22   :  { %p1393_p0 = por %p1392_p13, %p1391_p12 }
  0x24   :  { %p1394_p1 = pnand %p1393_p0, %p1387_p11 }
  0x26   :  { %1397 = shalt.err (!%p1394_p1)
}
  0x27   :  { %67 = dma.hbm_to_vmem [thread:$0]  %s1981_s3, 2048, %s62_s24, [#allocation9], %s1589_s19, %s1589_s19, %s1590_s20  }
  0x28   :  { %s1398_s17 = scalar_lea.hbm %s1983_s5, 16 }
  0x29   :  { %p1399_p2 = scmp.ne.s32.totalorder %s1983_s5, %s1398_s17  ;;  %p1402_p3 = scmp.lt.u32.totalorder %s1398_s17, %s1983_s5 }
  0x2b   :  { %p1404_p4 = pnand %p1402_p3, %p1399_p2 }
  0x2d   :  { %1407 = shalt.err (!%p1404_p4)
}
  0x2e   :  { %s1408_s25 = scalar_lea.vmem %s85_s26, 16  ;;  %s1412_s27 = scalar_lea.vmem %s85_s26, 32 }
  0x2f   :  { %p1409_p5 = scmp.ne.s32.totalorder %s85_s26, %s1408_s25  ;;  %p1413_p6 = scmp.lt.s32.totalorder %s85_s26, %s85_s26 }
  0x30   :  { %p1414_p7 = scmp.lt.s32.totalorder %s1412_s27, %s1408_s25 }
  0x32   :  { %p1415_p8 = por %p1414_p7, %p1413_p6 }
  0x34   :  { %p1416_p9 = pnand %p1415_p8, %p1409_p5 }
  0x36   :  { %1419 = shalt.err (!%p1416_p9)
}
  0x37   :  { %87 = dma.hbm_to_vmem [thread:$0]  %s1983_s5, 16, %s85_s26, [#allocation12]  }
  0x38   :  { %s1593_s28 = smov [#allocation2]   ;;  %s1594_s30 = smov [#allocation7]  }
  0x39   :  { %s28_s29 = sshll.u32 %s1593_s28, 4  ;;  %s49_s11 = sshll.u32 %s1594_s30, 4  ;;  %s29_s29 = int_to_ptr.vmem [resolvable:$true] %s28_s29  ;;  %s50_s11 = int_to_ptr.vmem [resolvable:$true] %s49_s11 }
  0x3a   :  { %s1420_s1 = scalar_lea.hbm %s1978_s0, 128 }
  0x3b   :  { %p1421_p10 = scmp.ne.s32.totalorder %s1978_s0, %s1420_s1  ;;  %p1424_p11 = scmp.lt.u32.totalorder %s1420_s1, %s1978_s0 }
  0x3d   :  { %p1426_p12 = pnand %p1424_p11, %p1421_p10 }
  0x3f   :  { %1429 = shalt.err (!%p1426_p12)
}
  0x40   :  { %s1430_s5 = scalar_lea.vmem %s29_s29, 128  ;;  %p1435_p0 = scmp.lt.s32.totalorder %s29_s29, %s29_s29 }
  0x41   :  { %p1431_p13 = scmp.ne.s32.totalorder %s29_s29, %s1430_s5  ;;  %p1436_p1 = scmp.lt.s32.totalorder %s1430_s5, %s1430_s5 }
  0x43   :  { %p1437_p2 = por %p1436_p1, %p1435_p0 }
  0x45   :  { %p1438_p3 = pnand %p1437_p2, %p1431_p13 }
  0x47   :  { %1441 = shalt.err (!%p1438_p3)
}
  0x48   :  { %31 = dma.hbm_to_vmem [thread:$0]  %s1978_s0, 128, %s29_s29, [#allocation3]  }
  0x49   :  { %s1442_s22 = scalar_lea.hbm %s1980_s2, 2048 }
  0x4a   :  { %p1443_p4 = scmp.ne.s32.totalorder %s1980_s2, %s1442_s22  ;;  %p1446_p5 = scmp.lt.u32.totalorder %s1442_s22, %s1980_s2 }
  0x4c   :  { %p1448_p6 = pnand %p1446_p5, %p1443_p4 }
  0x4e   :  { %1451 = shalt.err (!%p1448_p6)
}
  0x4f   :  { %s1452_s24 = scalar_lea.vmem %s50_s11, 2048  ;;  %p1457_p8 = scmp.lt.s32.totalorder %s50_s11, %s50_s11 }
  0x50   :  { %p1453_p7 = scmp.ne.s32.totalorder %s50_s11, %s1452_s24  ;;  %p1458_p9 = scmp.lt.s32.totalorder %s1452_s24, %s1452_s24 }
  0x52   :  { %p1459_p10 = por %p1458_p9, %p1457_p8 }
  0x54   :  { %p1460_p11 = pnand %p1459_p10, %p1453_p7 }
  0x56   :  { %1463 = shalt.err (!%p1460_p11)
}
  0x57   :  { %55 = dma.hbm_to_vmem [thread:$0]  %s1980_s2, 2048, %s50_s11, [#allocation6], %s1589_s19, %s1589_s19, %s1590_s20  }
  0x58   :  { %s1595_s29 = smov [#allocation10]   ;;  %s1596_s12 = smov [#allocation13]  }
  0x59   :  { %s74_s30 = sshll.u32 %s1595_s29, 4  ;;  %s93_s13 = sshll.u32 %s1596_s12, 4  ;;  %s75_s30 = int_to_ptr.vmem [resolvable:$true] %s74_s30  ;;  %s94_s13 = int_to_ptr.vmem [resolvable:$true] %s93_s13 }
  0x5a   :  { %s1464_s14 = scalar_lea.hbm %s1982_s4, 16 }
  0x5b   :  { %p1465_p12 = scmp.ne.s32.totalorder %s1982_s4, %s1464_s14  ;;  %p1468_p13 = scmp.lt.u32.totalorder %s1464_s14, %s1982_s4 }
  0x5d   :  { %p1470_p0 = pnand %p1468_p13, %p1465_p12 }
  0x5f   :  { %1473 = shalt.err (!%p1470_p0)
}
  0x60   :  { %s1474_s2 = scalar_lea.vmem %s75_s30, 16  ;;  %s1478_s11 = scalar_lea.vmem %s75_s30, 32 }
  0x61   :  { %p1475_p1 = scmp.ne.s32.totalorder %s75_s30, %s1474_s2  ;;  %p1479_p2 = scmp.lt.s32.totalorder %s75_s30, %s75_s30 }
  0x62   :  { %p1480_p3 = scmp.lt.s32.totalorder %s1478_s11, %s1474_s2 }
  0x64   :  { %p1481_p4 = por %p1480_p3, %p1479_p2 }
  0x66   :  { %p1482_p5 = pnand %p1481_p4, %p1475_p1 }
  0x68   :  { %1485 = shalt.err (!%p1482_p5)
}
  0x69   :  { %77 = dma.hbm_to_vmem [thread:$0]  %s1982_s4, 16, %s75_s30, [#allocation9]  }
  0x6a   :  { %s1486_s23 = scalar_lea.hbm %s1984_s6, 2048 }
  0x6b   :  { %p1487_p6 = scmp.ne.s32.totalorder %s1984_s6, %s1486_s23  ;;  %p1490_p7 = scmp.lt.u32.totalorder %s1486_s23, %s1984_s6 }
  0x6d   :  { %p1492_p8 = pnand %p1490_p7, %p1487_p6 }
  0x6f   :  { %1495 = shalt.err (!%p1492_p8)
}
  0x70   :  { %s1496_s0 = scalar_lea.vmem %s94_s13, 2048  ;;  %p1501_p10 = scmp.lt.s32.totalorder %s94_s13, %s94_s13 }
  0x71   :  { %p1497_p9 = scmp.ne.s32.totalorder %s94_s13, %s1496_s0  ;;  %p1502_p11 = scmp.lt.s32.totalorder %s1496_s0, %s1496_s0 }
  0x73   :  { %p1503_p12 = por %p1502_p11, %p1501_p10 }
  0x75   :  { %p1504_p13 = pnand %p1503_p12, %p1497_p9 }
  0x77   :  { %1507 = shalt.err (!%p1504_p13)
}
  0x78   :  { %99 = dma.hbm_to_vmem [thread:$0]  %s1984_s6, 2048, %s94_s13, [#allocation12], %s1589_s19, %s1589_s19, %s1590_s20  }
  0x79   :  { %s1597_s29 = smov [#allocation14]   ;;  %s1508_s10 = scalar_lea.hbm %s1985_s7, 16 }
  0x7a   :  { %s106_s30 = sshll.u32 %s1597_s29, 4  ;;  %p1509_p0 = scmp.ne.s32.totalorder %s1985_s7, %s1508_s10  ;;  %s107_s30 = int_to_ptr.vmem [resolvable:$true] %s106_s30 }
  0x7b   :  { %p1512_p1 = scmp.lt.u32.totalorder %s1508_s10, %s1985_s7 }
  0x7d   :  { %p1514_p2 = pnand %p1512_p1, %p1509_p0 }
  0x7f   :  { %1517 = shalt.err (!%p1514_p2)
}
  0x80   :  { %s1518_s26 = scalar_lea.vmem %s107_s30, 16  ;;  %s1522_s6 = scalar_lea.vmem %s107_s30, 32 }
  0x81   :  { %p1519_p3 = scmp.ne.s32.totalorder %s107_s30, %s1518_s26  ;;  %p1523_p4 = scmp.lt.s32.totalorder %s107_s30, %s107_s30 }
  0x82   :  { %p1524_p5 = scmp.lt.s32.totalorder %s1522_s6, %s1518_s26 }
  0x84   :  { %p1525_p6 = por %p1524_p5, %p1523_p4 }
  0x86   :  { %p1526_p7 = pnand %p1525_p6, %p1519_p3 }
  0x88   :  { %1529 = shalt.err (!%p1526_p7)
}
  0x89   :  { %109 = dma.hbm_to_vmem [thread:$0]  %s1985_s7, 16, %s107_s30, [#allocation15]  }
  0x8a   :  { %1574 = dma.done.wait [#allocation3], 128  }
  0x8b   :  { %1575 = vsyncadd [#allocation3], 4294967168 }
  0x8c   :  { %1576 = dma.done.wait [#allocation6], 3072  }
  0x8d   :  { %1577 = vsyncadd [#allocation6], 4294964224 }
  0x8e   :  { %1578 = dma.done.wait [#allocation9], 2064  }
  0x8f   :  { %1579 = vsyncadd [#allocation9], 4294965232 }
  0x90   :  { %1580 = dma.done.wait [#allocation12], 2064  }
  0x91   :  { %1581 = vsyncadd [#allocation12], 4294965232 }
  0x92   :  { %1582 = dma.done.wait [#allocation15], 16  }
  0x93   :  { %1583 = vsyncadd [#allocation15], 4294967280  ;;  %v1598_v0 = vmov 0.0|0.0   ;;  %vm1599_vm0 = vmmov 0   ;;  %v1600_v1 = vmov 0.0   ;;  %v135_v2 = vld [vmem:[#allocation7] sm:$0xff]  ;;  %v362_v61 = vlaneseq }
  0x94   :  { %1207 = vmatprep.subr.bf16.mxu0 %v1598_v0  ;;  %1125 = vmatprep.mubr.msk.f32.mxu0 %vm1599_vm0, %v1600_v1  ;;  %v136_v3 = vld [vmem:[#allocation7 + $0x8] sm:$0xff]  ;;  %v236_v4 = vld [vmem:[#allocation8] sm:$0xff]  ;;  %v137_v7 = vld [vmem:[#allocation7 + $0x10] sm:$0xff]  ;;  %v1601_v59 = vmov 1966171168   ;;  %vm536_vm1 = vcmask 1041409  }
  0x95   :  { %v1208_v5 = vpack.c.bf16 %v136_v3, %v135_v2  ;;  %v237_v6 = vld [vmem:[#allocation8 + $0x8] sm:$0xff]  ;;  %v138_v8 = vld [vmem:[#allocation7 + $0x18] sm:$0xff]  ;;  %v238_v10 = vld [vmem:[#allocation8 + $0x10] sm:$0xff]  ;;  %v360_v60 = vunpack.c.l.s4 %v1601_v59  ;;  %v1801_v63 = vshrl.u32 %v362_v61, 7  ;;  %vm538_vm2 = vcmask 1042434   ;;  %s1603_s7 = smov [#allocation16]  }
  0x96   :  { %v1231_v9 = vpack.c.bf16 %v237_v6, %v236_v4  ;;  %v239_v11 = vld [vmem:[#allocation8 + $0x18] sm:$0xff]  ;;  %v1211_v12 = vpack.c.bf16 %v138_v8, %v137_v7  ;;  %v240_v14 = vld [vmem:[#allocation8 + $0x20] sm:$0xff]  ;;  %v241_v15 = vld [vmem:[#allocation8 + $0x28] sm:$0xff]  ;;  %vm540_vm3 = vcmask 1043459   ;;  %vm542_vm4 = vcmask 1044484   ;;  %s1005_s13 = sshll.u32 %s1603_s7, 4  ;;  %s1006_s13 = int_to_ptr.vmem [resolvable:$true] %s1005_s13 }
  0x97   :  { %1209 = vmatpush3.bf16.msra.mxu0 %v1208_v5  ;;  %v1235_v13 = vpack.c.bf16 %v239_v11, %v238_v10  ;;  %v139_v16 = vld [vmem:[#allocation7 + $0x20] sm:$0xff]  ;;  %v140_v17 = vld [vmem:[#allocation7 + $0x28] sm:$0xff]  ;;  %v1239_v18 = vpack.c.bf16 %v241_v15, %v240_v14  ;;  %v242_v20 = vld [vmem:[#allocation8 + $0x30] sm:$0xff]  ;;  %v361_v62 = vunpack.c.0.s8 %v360_v60  ;;  %vm544_vm5 = vcmask 1045509   ;;  %s1530_s2 = scalar_lea.vmem %s1006_s13, 128  ;;  %p1535_p9 = scmp.lt.s32.totalorder %s1006_s13, %s1006_s13 }
  0x98   :  { %1232 = vmatprep.subr.bf16.mxu1 %v1231_v9  ;;  %1210 = vmatprep.subr.bf16.mxu0 %v1598_v0  ;;  %v1214_v19 = vpack.c.bf16 %v140_v17, %v139_v16  ;;  %v243_v21 = vld [vmem:[#allocation8 + $0x38] sm:$0xff]  ;;  %v141_v22 = vld [vmem:[#allocation7 + $0x30] sm:$0xff]  ;;  %v244_v26 = vld [vmem:[#allocation8 + $0x40] sm:$0xff]  ;;  %vm546_vm6 = vcmask 1046534   ;;  %vm548_vm7 = vcmask 1047559   ;;  %vm551_vm8 = vcmask 64512   ;;  %p1531_p8 = scmp.ne.s32.totalorder %s1006_s13, %s1530_s2  ;;  %p1536_p10 = scmp.lt.s32.totalorder %s1530_s2, %s1530_s2 }
  0x99   :  { %1234 = vmatpush3.bf16.msra.mxu1 %v1231_v9  ;;  %v142_v23 = vld [vmem:[#allocation7 + $0x38] sm:$0xff]  ;;  %v1243_v24 = vpack.c.bf16 %v243_v21, %v242_v20  ;;  %v245_v27 = vld [vmem:[#allocation8 + $0x48] sm:$0xff]  ;;  %v1768_v28 = vld [vmem:[#allocation5] sm:$0xff]  ;;  %v364_v2 = vsub.s32 %v361_v62, %v1801_v63  ;;  %v1805_v9 = vsub.s32 0, %v1801_v63 }
  0x9a   :  { %1236 = vmatprep.subr.bf16.mxu1 %v1235_v13  ;;  %v1217_v25 = vpack.c.bf16 %v142_v23, %v141_v22  ;;  %v143_v29 = vld [vmem:[#allocation7 + $0x40] sm:$0xff]  ;;  %v144_v30 = vld [vmem:[#allocation7 + $0x48] sm:$0xff]  ;;  %1160 = vmatprep.mubr.f32.mxu1 %v1768_v28  ;;  %v1247_v31 = vpack.c.bf16 %v245_v27, %v244_v26  ;;  %v246_v33 = vld [vmem:[#allocation8 + $0x50] sm:$0xff]  ;;  %p1537_p11 = por %p1536_p10, %p1535_p9 }
  0x9b   :  { %1212 = vmatpush3.bf16.msra.mxu0 %v1211_v12  ;;  %v1220_v32 = vpack.c.bf16 %v144_v30, %v143_v29  ;;  %v247_v34 = vld [vmem:[#allocation8 + $0x58] sm:$0xff]  ;;  %v145_v35 = vld [vmem:[#allocation7 + $0x50] sm:$0xff]  ;;  %v248_v39 = vld [vmem:[#allocation8 + $0x60] sm:$0xff] }
  0x9c   :  { %1213 = vmatprep.subr.bf16.mxu0 %v1598_v0  ;;  %v146_v36 = vld [vmem:[#allocation7 + $0x58] sm:$0xff]  ;;  %v1251_v37 = vpack.c.bf16 %v247_v34, %v246_v33  ;;  %v249_v40 = vld [vmem:[#allocation8 + $0x68] sm:$0xff]  ;;  %v147_v41 = vld [vmem:[#allocation7 + $0x60] sm:$0xff]  ;;  %p1538_p12 = pnand %p1537_p11, %p1531_p8 }
  0x9d   :  { %1238 = vmatpush3.bf16.msra.mxu1 %v1235_v13  ;;  %v1223_v38 = vpack.c.bf16 %v146_v36, %v145_v35  ;;  %v148_v42 = vld [vmem:[#allocation7 + $0x68] sm:$0xff]  ;;  %v1255_v43 = vpack.c.bf16 %v249_v40, %v248_v39  ;;  %v250_v45 = vld [vmem:[#allocation8 + $0x70] sm:$0xff]  ;;  %v251_v46 = vld [vmem:[#allocation8 + $0x78] sm:$0xff] }
  0x9e   :  { %1240 = vmatprep.subr.bf16.mxu1 %v1239_v18  ;;  %v1226_v44 = vpack.c.bf16 %v148_v42, %v147_v41  ;;  %v149_v47 = vld [vmem:[#allocation7 + $0x70] sm:$0xff]  ;;  %v150_v48 = vld [vmem:[#allocation7 + $0x78] sm:$0xff]  ;;  %v1259_v49 = vpack.c.bf16 %v251_v46, %v250_v45  ;;  %v1777_v52 = vld [vmem:[#allocation5 + $0x8] sm:$0xff] }
  0x9f   :  { %1215 = vmatpush3.bf16.msra.mxu0 %v1214_v19  ;;  %v1229_v50 = vpack.c.bf16 %v150_v48, %v149_v47  ;;  %v134_v51 = vld [vmem:[#allocation2] sm:$0xff]  ;;  %v1779_v53 = vld [vmem:[#allocation5 + $0x10] sm:$0xff]  ;;  %v1787_v55 = vld [vmem:[#allocation5 + $0x20] sm:$0xff] }
  0xa0   :  { %1216 = vmatprep.subr.bf16.mxu0 %v1598_v0  ;;  %v1785_v54 = vld [vmem:[#allocation5 + $0x18] sm:$0xff]  ;;  %v1791_v56 = vld [vmem:[#allocation5 + $0x28] sm:$0xff]  ;;  %v1793_v57 = vld [vmem:[#allocation5 + $0x30] sm:$0xff] }
  0xa1   :  { %1242 = vmatpush3.bf16.msra.mxu1 %v1239_v18  ;;  %v1797_v58 = vld [vmem:[#allocation5 + $0x38] sm:$0xff]  ;;  %v1033_v45 = vld [vmem:[#allocation11] ss:$0 sm:$0xff] }
  0xa2   :  { %1244 = vmatprep.subr.bf16.mxu1 %v1243_v24 }
  0xa3   :  { %1218 = vmatpush3.bf16.msra.mxu0 %v1217_v25 }
  0xa4   :  { %1219 = vmatprep.subr.bf16.mxu0 %v1598_v0 }
  0xa5   :  { %1246 = vmatpush3.bf16.msra.mxu1 %v1243_v24 }
  0xa6   :  { %1248 = vmatprep.subr.bf16.mxu1 %v1247_v31 }
  0xa7   :  { %1221 = vmatpush3.bf16.msra.mxu0 %v1220_v32 }
  0xa8   :  { %1222 = vmatprep.subr.bf16.mxu0 %v1598_v0 }
  0xa9   :  { %1250 = vmatpush3.bf16.msra.mxu1 %v1247_v31 }
  0xaa   :  { %1252 = vmatprep.subr.bf16.mxu1 %v1251_v37 }
  0xab   :  { %1224 = vmatpush3.bf16.msra.mxu0 %v1223_v38 }
  0xac   :  { %1225 = vmatprep.subr.bf16.mxu0 %v1598_v0 }
  0xad   :  { %1254 = vmatpush3.bf16.msra.mxu1 %v1251_v37 }
  0xae   :  { %1256 = vmatprep.subr.bf16.mxu1 %v1255_v43 }
  0xaf   :  { %1227 = vmatpush3.bf16.msra.mxu0 %v1226_v44 }
  0xb0   :  { %1228 = vmatprep.subr.bf16.mxu0 %v1598_v0 }
  0xb1   :  { %1258 = vmatpush3.bf16.msra.mxu1 %v1255_v43 }
  0xb2   :  { %1260 = vmatprep.subr.bf16.mxu1 %v1259_v49 }
  0xb3   :  { %1230 = vmatpush3.bf16.msra.mxu0 %v1229_v50 }
  0xb4   :  { %1263 = vmatprep.subr.bf16.mxu0 %v1598_v0 }
  0xb5   :  { %1262 = vmatpush3.bf16.msra.mxu1 %v1259_v49 }
  0xb6   :  { %1126 = vmatmul.mubr.f32.vlgmr.msra.gmra.mrb[0].mxu0 %v134_v51 }
  0xb7   :  { %1204 = vmatprep.mubr.msk.f32.mxu0 %vm1599_vm0, %v1600_v1  ;;  %v1032_v1 = vld [vmem:[#allocation10] ss:$0 sm:$0xff] }
  0xb8   :  { %1161 = vmatmul.mubr.f32.vlgmr.msra.gmra.mrb[0].mxu1 %v1777_v52 }
  0xb9   :  { %1163 = vmatprep.mubr.f32.mxu1 %v1779_v53 }
  0xbc   :  { %1164 = vmatmul.mubr.f32.gmra.mrb[2].mxu1 %v1785_v54 }
  0xbd   :  { %1166 = vmatprep.mubr.f32.mxu1 %v1787_v55 }
  0xc0   :  { %1167 = vmatmul.mubr.f32.gmra.mrb[4].mxu1 %v1791_v56 }
  0xc1   :  { %1169 = vmatprep.mubr.f32.mxu1 %v1793_v57 }
  0xc4   :  { %1170 = vmatmul.mubr.f32.gmra.mrb[6].mxu1 %v1797_v58 }
 0x189   :  { %v224_v3 = vpop.f32.mrb[0].mxu0 }
 0x18a   :  { %v225_v4 = vadd.f32 %v1032_v1, %v224_v3  ;;  %v1127_v5 = vpop.f32.mrb[1].mxu0 }
 0x18b   :  { %v1162_v6 = vpop.f32.mrb[0].mxu1 }
 0x18c   :  { %v358_v7 = vcombine.high %v225_v4, %v225_v4  ;;  %v365_v8 = vrot.slane %v225_v4, %v364_v2  ;;  %v318_v10 = vpop.f32.mrb[1].mxu1 }
 0x18e   :  { %v372_v11 = vrot.slane %v358_v7, %v364_v2  ;;  %v373_v12 = vcombine.high %v365_v8, %v365_v8  ;;  %v381_v13 = vrot.slane %v365_v8, %v364_v2  ;;  %v503_v8 = vand.u32 127, %v362_v61 }
 0x18f   :  { %v1165_v14 = vpop.f32.mrb[2].mxu1 }
 0x190   :  { %v395_v15 = vrot.slane %v373_v12, %v364_v2  ;;  %v410_v16 = vrot.slane %v381_v13, %v1805_v9  ;;  %v328_v17 = vpop.f32.mrb[3].mxu1  ;;  %v403_v18 = vcombine.high %v381_v13, %v381_v13  ;;  %v374_v19 = vcombine.high %v372_v11, %v372_v11 }
 0x191   :  { %v388_v20 = vrot.slane %v372_v11, %v364_v2  ;;  %v1817_v11 = vsub.s32 %v503_v8, %v1801_v63 }
 0x192   :  { %v414_v21 = vrot.slane %v395_v15, %v1805_v9  ;;  %v447_v22 = vadd.f32 %v410_v16, %v318_v10  ;;  %v405_v23 = vcombine.high %v395_v15, %v395_v15  ;;  %v418_v24 = vrot.slane %v403_v18, %v1805_v9 }
 0x193   :  { %v1168_v25 = vpop.f32.mrb[4].mxu1  ;;  %v402_v26 = vrot.slane %v374_v19, %v364_v2  ;;  %v426_v27 = vrot.slane %v388_v20, %v1805_v9  ;;  %v404_v29 = vcombine.high %v388_v20, %v388_v20 }
 0x194   :  { %v448_v30 = vadd.f32 %v1162_v6, %v414_v21  ;;  %1306 = vtanh.f32 %v447_v22  ;;  %v422_v31 = vrot.slane %v405_v23, %v1805_v9  ;;  %v449_v32 = vadd.f32 %v418_v24, %v328_v17  ;;  %v338_v33 = vpop.f32.mrb[5].mxu1 }
 0x195   :  { %v430_v34 = vrot.slane %v402_v26, %v1805_v9  ;;  %v451_v35 = vadd.f32 %v426_v27, %v338_v33  ;;  %v406_v36 = vcombine.high %v402_v26, %v402_v26  ;;  %v434_v41 = vrot.slane %v404_v29, %v1805_v9 }
 0x196   :  { %1308 = vtanh.f32 %v448_v30  ;;  %v450_v37 = vadd.f32 %v1165_v14, %v422_v31 }
 0x197   :  { %1310 = vtanh.f32 %v449_v32  ;;  %v452_v38 = vadd.f32 %v1168_v25, %v430_v34  ;;  %v1171_v39 = vpop.f32.mrb[6].mxu1  ;;  %v438_v40 = vrot.slane %v406_v36, %v1805_v9  ;;  %v562_v36 = vsub.s32 1, %v1801_v63 }
 0x198   :  { %v348_v42 = vpop.f32.mrb[7].mxu1  ;;  %1312 = vtanh.f32 %v450_v37  ;;  %v566_v37 = vsub.s32 2, %v1801_v63 }
 0x199   :  { %v454_v43 = vadd.f32 %v1171_v39, %v438_v40  ;;  %v453_v44 = vadd.f32 %v434_v41, %v348_v42  ;;  %1314 = vtanh.f32 %v451_v35  ;;  %v1602_v35 = vmov 0  }
 0x19a   :  { %1316 = vtanh.f32 %v452_v38  ;;  %1305 = vset.pattern.permute.xlu0 %v1602_v35  ;;  %1304 = vset.pattern.permute.xlu1 %v1602_v35  ;;  %v570_v38 = vsub.s32 3, %v1801_v63 }
 0x19b   :  { %1318 = vtanh.f32 %v453_v44 }
 0x19c   :  { %1320 = vtanh.f32 %v454_v43  ;;  %v574_v43 = vsub.s32 4, %v1801_v63 }
 0x19e   :  { %v1307_v46 = vpop.eup %1306 }
 0x19f   :  { %v470_v47 = vmul.f32 %v1307_v46, %v1033_v45 }
 0x1a0   :  { %v1309_v48 = vpop.eup %1308 }
 0x1a1   :  { %v1311_v49 = vpop.eup %1310  ;;  %478 = vadd.xlane.f32.xlu0 %v470_v47  ;;  %v471_v59 = vmul.f32 %v1309_v48, %v1033_v45 }
 0x1a2   :  { %v472_v50 = vmul.f32 %v1311_v49, %v1033_v45  ;;  %v1313_v51 = vpop.eup %1312 }
 0x1a3   :  { %v1315_v60 = vpop.eup %1314  ;;  %v473_v62 = vmul.f32 %v1313_v51, %v1033_v45 }
 0x1a4   :  { %482 = vadd.xlane.f32.xlu1 %v472_v50  ;;  %v1317_v1 = vpop.eup %1316  ;;  %v474_v2 = vmul.f32 %v1315_v60, %v1033_v45  ;;  %v578_v50 = vsub.s32 5, %v1801_v63 }
 0x1a5   :  { %480 = vadd.xlane.f32.xlu0 %v471_v59  ;;  %v1319_v3 = vpop.eup %1318  ;;  %v475_v4 = vmul.f32 %v1317_v1, %v1033_v45 }
 0x1a6   :  { %v1321_v5 = vpop.eup %1320  ;;  %v476_v6 = vmul.f32 %v1319_v3, %v1033_v45 }
 0x1a7   :  { %v477_v7 = vmul.f32 %v1321_v5, %v1033_v45 }
 0x1a8   :  { %484 = vadd.xlane.f32.xlu1 %v473_v62  ;;  %v582_v62 = vsub.s32 6, %v1801_v63 }
 0x1a9   :  { %486 = vadd.xlane.f32.xlu0 %v474_v2 }
 0x1ac   :  { %488 = vadd.xlane.f32.xlu1 %v475_v4  ;;  %v586_v4 = vsub.s32 7, %v1801_v63  ;;  %v850_v63 = vld [vmem:[#allocation13 + $0x10] sm:$0xff] }
 0x1ad   :  { %490 = vadd.xlane.f32.xlu0 %v476_v6 }
 0x1b0   :  { %492 = vadd.xlane.f32.xlu1 %v477_v7 }
 0x22e   :  { %v479_v10 = vpop.xlane.xlu0 %478 }
 0x22f   :  { %v507_v14 = vrot.slane %v479_v10, %v1817_v11 }
 0x231   :  { %v483_v12 = vpop.xlane.xlu1 %482 }
 0x232   :  { %v481_v13 = vpop.xlane.xlu0 %480  ;;  %v515_v16 = vrot.slane %v483_v12, %v1817_v11 }
 0x233   :  { %v511_v15 = vrot.slane %v481_v13, %v1817_v11 }
 0x235   :  { %v537_v17 = vsel %vm536_vm1, %v511_v15, %v507_v14  ;;  %v485_v18 = vpop.xlane.xlu1 %484 }
 0x236   :  { %v539_v61 = vsel %vm538_vm2, %v515_v16, %v537_v17  ;;  %v519_v19 = vrot.slane %v485_v18, %v1817_v11  ;;  %v487_v20 = vpop.xlane.xlu0 %486 }
 0x237   :  { %v523_v21 = vrot.slane %v487_v20, %v1817_v11 }
 0x238   :  { %v541_v22 = vsel %vm540_vm3, %v519_v19, %v539_v61 }
 0x239   :  { %v543_v23 = vsel %vm542_vm4, %v523_v21, %v541_v22  ;;  %v489_v24 = vpop.xlane.xlu1 %488 }
 0x23a   :  { %v527_v25 = vrot.slane %v489_v24, %v1817_v11  ;;  %v491_v26 = vpop.xlane.xlu0 %490 }
 0x23b   :  { %v531_v27 = vrot.slane %v491_v26, %v1817_v11 }
 0x23c   :  { %v545_v29 = vsel %vm544_vm5, %v527_v25, %v543_v23 }
 0x23d   :  { %v493_v30 = vpop.xlane.xlu1 %492  ;;  %v547_v31 = vsel %vm546_vm6, %v531_v27, %v545_v29 }
 0x23e   :  { %v535_v32 = vrot.slane %v493_v30, %v1817_v11 }
 0x240   :  { %v549_v33 = vsel %vm548_vm7, %v535_v32, %v547_v31 }
 0x241   :  { %v552_v34 = vsel %vm551_vm8, %v549_v33, -inf }
 0x242   :  { %553 = vmax.xlane.f32.xlu0 %v552_v34 }
 0x2cf   :  { %v554_v39 = vpop.xlane.xlu0 %553 }
 0x2d0   :  { %v559_v40 = vrot.slane %v554_v39, %v1805_v9  ;;  %v563_v41 = vrot.slane %v554_v39, %v562_v36  ;;  %v567_v42 = vrot.slane %v554_v39, %v566_v37  ;;  %v571_v44 = vrot.slane %v554_v39, %v570_v38 }
 0x2d1   :  { %v575_v51 = vrot.slane %v554_v39, %v574_v43  ;;  %v579_v1 = vrot.slane %v554_v39, %v578_v50  ;;  %v583_v5 = vrot.slane %v554_v39, %v582_v62 }
 0x2d2   :  { %v596_v45 = vsub.f32 %v479_v10, %v559_v40  ;;  %v597_v46 = vsub.f32 %v481_v13, %v563_v41  ;;  %v598_v47 = vsub.f32 %v483_v12, %v567_v42  ;;  %v599_v59 = vsub.f32 %v485_v18, %v571_v44 }
 0x2d3   :  { %v600_v2 = vsub.f32 %v487_v20, %v575_v51  ;;  %v601_v6 = vsub.f32 %v489_v24, %v579_v1  ;;  %v587_v12 = vrot.slane %v554_v39, %v586_v4  ;;  %v602_v13 = vsub.f32 %v491_v26, %v583_v5 }
 0x2d4   :  { %v604_v48 = vmul.f32 1.442695, %v596_v45  ;;  %v606_v49 = vmul.f32 1.442695, %v597_v46  ;;  %v608_v60 = vmul.f32 1.442695, %v598_v47 }
 0x2d5   :  { %v610_v3 = vmul.f32 1.442695, %v599_v59  ;;  %v612_v7 = vmul.f32 1.442695, %v600_v2  ;;  %v614_v14 = vmul.f32 1.442695, %v601_v6  ;;  %v603_v16 = vsub.f32 %v493_v30, %v587_v12 }
 0x2d6   :  { %1322 = vpow2.f32 %v604_v48  ;;  %v616_v17 = vmul.f32 1.442695, %v602_v13 }
 0x2d7   :  { %1324 = vpow2.f32 %v606_v49  ;;  %v618_v61 = vmul.f32 1.442695, %v603_v16 }
 0x2d8   :  { %1326 = vpow2.f32 %v608_v60 }
 0x2d9   :  { %1328 = vpow2.f32 %v610_v3 }
 0x2da   :  { %1330 = vpow2.f32 %v612_v7 }
 0x2db   :  { %1332 = vpow2.f32 %v614_v14 }
 0x2dc   :  { %1334 = vpow2.f32 %v616_v17 }
 0x2dd   :  { %1336 = vpow2.f32 %v618_v61  ;;  %v848_v61 = vld [vmem:[#allocation13] sm:$0xff] }
 0x2e0   :  { %v1323_v8 = vpop.eup %1322 }
 0x2e1   :  { %v1855_v10 = vpop.eup %1324  ;;  %629 = vperm.xlu1 %1304, %v1323_v8  }
 0x2e2   :  { %632 = vperm.xlu0 %1305, %v1855_v10   ;;  %v1860_v15 = vpop.eup %1326 }
 0x2e3   :  { %v1863_v18 = vpop.eup %1328 }
 0x2e4   :  { %v1866_v19 = vpop.eup %1330 }
 0x2e5   :  { %635 = vperm.xlu1 %1304, %v1860_v15   ;;  %v1869_v20 = vpop.eup %1332 }
 0x2e6   :  { %v1872_v21 = vpop.eup %1334 }
 0x2e7   :  { %v1875_v22 = vpop.eup %1336 }
 0x2e9   :  { %638 = vperm.xlu1 %1304, %v1863_v18  }
 0x2ed   :  { %641 = vperm.xlu1 %1304, %v1866_v19  }
 0x2f1   :  { %644 = vperm.xlu1 %1304, %v1869_v20  }
 0x2f5   :  { %647 = vperm.xlu1 %1304, %v1872_v21  }
 0x2f9   :  { %650 = vperm.xlu1 %1304, %v1875_v22  }
 0x360   :  { %v630_v23 = vpop.permute.xlu1 %629 }
 0x361   :  { %v633_v27 = vpop.permute.xlu0 %632  ;;  %v655_v31 = vrot.slane %v630_v23, %v1817_v11  ;;  %v849_v23 = vld [vmem:[#allocation13 + $0x8] sm:$0xff] }
 0x362   :  { %v659_v30 = vrot.slane %v633_v27, %v1817_v11  ;;  %v853_v27 = vld [vmem:[#allocation13 + $0x28] sm:$0xff] }
 0x364   :  { %v636_v24 = vpop.permute.xlu1 %635  ;;  %v684_v39 = vsel %vm536_vm1, %v659_v30, %v655_v31  ;;  %v854_v30 = vld [vmem:[#allocation13 + $0x30] sm:$0xff]  ;;  %v855_v31 = vld [vmem:[#allocation13 + $0x38] sm:$0xff] }
 0x365   :  { %v663_v32 = vrot.slane %v636_v24, %v1817_v11 }
 0x367   :  { %v685_v41 = vsel %vm538_vm2, %v663_v32, %v684_v39  ;;  %v1273_v32 = vpack.c.bf16 %v855_v31, %v854_v30  ;;  %v859_v39 = vld [vmem:[#allocation13 + $0x58] sm:$0xff] }
 0x368   :  { %v639_v25 = vpop.permute.xlu1 %638 }
 0x369   :  { %v667_v33 = vrot.slane %v639_v25, %v1817_v11 }
 0x36b   :  { %v686_v44 = vsel %vm540_vm3, %v667_v33, %v685_v41  ;;  %v857_v33 = vld [vmem:[#allocation13 + $0x48] sm:$0xff] }
 0x36c   :  { %v642_v26 = vpop.permute.xlu1 %641  ;;  %v861_v41 = vld [vmem:[#allocation13 + $0x68] sm:$0xff] }
 0x36d   :  { %v671_v34 = vrot.slane %v642_v26, %v1817_v11 }
 0x36f   :  { %v687_v45 = vsel %vm542_vm4, %v671_v34, %v686_v44 }
 0x370   :  { %v645_v29 = vpop.permute.xlu1 %644 }
 0x371   :  { %v675_v40 = vrot.slane %v645_v29, %v1817_v11 }
 0x373   :  { %v688_v47 = vsel %vm544_vm5, %v675_v40, %v687_v45  ;;  %v863_v45 = vld [vmem:[#allocation13 + $0x78] sm:$0xff] }
 0x374   :  { %v648_v35 = vpop.permute.xlu1 %647 }
 0x375   :  { %v679_v42 = vrot.slane %v648_v35, %v1817_v11  ;;  %v858_v35 = vld [vmem:[#allocation13 + $0x50] sm:$0xff] }
 0x376   :  { %v1279_v40 = vpack.c.bf16 %v859_v39, %v858_v35 }
 0x377   :  { %v689_v49 = vsel %vm546_vm6, %v679_v42, %v688_v47  ;;  %v862_v42 = vld [vmem:[#allocation13 + $0x70] sm:$0xff] }
 0x378   :  { %v651_v46 = vpop.permute.xlu1 %650 }
 0x379   :  { %v683_v48 = vrot.slane %v651_v46, %v1817_v11  ;;  %v1285_v46 = vpack.c.bf16 %v863_v45, %v862_v42 }
 0x37b   :  { %v690_v51 = vsel %vm548_vm7, %v683_v48, %v689_v49 }
 0x37c   :  { %v692_v59 = vsel %vm551_vm8, %v690_v51, 0.0 }
 0x37d   :  { %693 = vadd.xlane.f32.xlu1 %v692_v59 }
 0x40a   :  { %v694_v60 = vpop.xlane.xlu1 %693 }
 0x40b   :  { %v699_v1 = vrot.slane %v694_v60, %v1805_v9  ;;  %v703_v2 = vrot.slane %v694_v60, %v562_v36  ;;  %v707_v3 = vrot.slane %v694_v60, %v566_v37  ;;  %v711_v5 = vrot.slane %v694_v60, %v570_v38 }
 0x40c   :  { %v715_v7 = vrot.slane %v694_v60, %v574_v43  ;;  %v719_v9 = vrot.slane %v694_v60, %v578_v50  ;;  %v723_v37 = vrot.slane %v694_v60, %v582_v62  ;;  %v727_v43 = vrot.slane %v694_v60, %v586_v4  ;;  %v851_v4 = vld [vmem:[#allocation13 + $0x18] sm:$0xff] }
 0x40d   :  { %1338 = vrcp.f32 %v699_v1  ;;  %v1264_v62 = vpack.c.bf16 %v849_v23, %v848_v61 }
 0x40e   :  { %1340 = vrcp.f32 %v703_v2 }
 0x40f   :  { %1342 = vrcp.f32 %v707_v3  ;;  %1265 = vmatpush3.bf16.msra.mxu0 %v1264_v62 }
 0x410   :  { %1344 = vrcp.f32 %v711_v5  ;;  %1266 = vmatprep.subr.bf16.mxu0 %v1598_v0 }
 0x411   :  { %1346 = vrcp.f32 %v715_v7 }
 0x412   :  { %1348 = vrcp.f32 %v719_v9 }
 0x413   :  { %1350 = vrcp.f32 %v723_v37 }
 0x414   :  { %1352 = vrcp.f32 %v727_v43 }
 0x417   :  { %v1339_v6 = vpop.eup %1338 }
 0x418   :  { %v737_v12 = vmul.f32 %v1339_v6, %v1323_v8  ;;  %v1341_v13 = vpop.eup %1340 }
 0x419   :  { %v739_v36 = vmul.f32 %v1341_v13, %v1855_v10  ;;  %v1343_v14 = vpop.eup %1342 }
 0x41a   :  { %754 = vperm.xlu0 %1305, %v737_v12   ;;  %v741_v38 = vmul.f32 %v1343_v14, %v1860_v15  ;;  %v1345_v16 = vpop.eup %1344 }
 0x41b   :  { %v743_v8 = vmul.f32 %v1345_v16, %v1863_v18  ;;  %v1347_v17 = vpop.eup %1346  ;;  %v1267_v18 = vpack.c.bf16 %v851_v4, %v850_v63 }
 0x41c   :  { %v745_v50 = vmul.f32 %v1347_v17, %v1866_v19  ;;  %v1349_v10 = vpop.eup %1348  ;;  %v852_v19 = vld [vmem:[#allocation13 + $0x20] sm:$0xff] }
 0x41d   :  { %v747_v15 = vmul.f32 %v1349_v10, %v1869_v20  ;;  %v1351_v24 = vpop.eup %1350  ;;  %1268 = vmatpush3.bf16.msra.mxu0 %v1267_v18  ;;  %v1270_v29 = vpack.c.bf16 %v853_v27, %v852_v19 }
 0x41e   :  { %759 = vperm.xlu0 %1305, %v739_v36   ;;  %v749_v25 = vmul.f32 %v1351_v24, %v1872_v21  ;;  %v1353_v26 = vpop.eup %1352  ;;  %1269 = vmatprep.subr.bf16.mxu0 %v1598_v0  ;;  %v856_v21 = vld [vmem:[#allocation13 + $0x40] sm:$0xff] }
 0x41f   :  { %v751_v20 = vmul.f32 %v1353_v26, %v1875_v22  ;;  %v1276_v34 = vpack.c.bf16 %v857_v33, %v856_v21  ;;  %v860_v22 = vld [vmem:[#allocation13 + $0x60] sm:$0xff] }
 0x420   :  { %v1282_v44 = vpack.c.bf16 %v861_v41, %v860_v22 }
 0x421   :  { %1271 = vmatpush3.bf16.msra.mxu0 %v1270_v29 }
 0x422   :  { %764 = vperm.xlu0 %1305, %v741_v38   ;;  %1272 = vmatprep.subr.bf16.mxu0 %v1598_v0 }
 0x425   :  { %1274 = vmatpush3.bf16.msra.mxu0 %v1273_v32 }
 0x426   :  { %769 = vperm.xlu0 %1305, %v743_v8   ;;  %1275 = vmatprep.subr.bf16.mxu0 %v1598_v0 }
 0x429   :  { %1277 = vmatpush3.bf16.msra.mxu0 %v1276_v34 }
 0x42a   :  { %774 = vperm.xlu0 %1305, %v745_v50   ;;  %1278 = vmatprep.subr.bf16.mxu0 %v1598_v0 }
 0x42d   :  { %1280 = vmatpush3.bf16.msra.mxu0 %v1279_v40 }
 0x42e   :  { %779 = vperm.xlu0 %1305, %v747_v15   ;;  %1281 = vmatprep.subr.bf16.mxu0 %v1598_v0 }
 0x431   :  { %1283 = vmatpush3.bf16.msra.mxu0 %v1282_v44 }
 0x432   :  { %784 = vperm.xlu0 %1305, %v749_v25   ;;  %1284 = vmatprep.subr.bf16.mxu0 %v1598_v0 }
 0x435   :  { %1286 = vmatpush3.bf16.msra.mxu0 %v1285_v46 }
 0x436   :  { %789 = vperm.xlu0 %1305, %v751_v20  }
 0x499   :  { %v755_v47 = vpop.permute.xlu0 %754 }
 0x49a   :  { %v792_v59 = vmul.f32 %v755_v47, %v1768_v28  ;;  %v960_v17 = vrot.slane %v755_v47, %v1817_v11 }
 0x49c   :  { %v800_v5 = vrot.slane %v792_v59, 4 }
 0x49d   :  { %v760_v48 = vpop.permute.xlu0 %759 }
 0x49e   :  { %v793_v49 = vmul.f32 %v760_v48, %v1777_v52  ;;  %v801_v9 = vadd.f32 %v800_v5, %v792_v59  ;;  %v964_v28 = vrot.slane %v760_v48, %v1817_v11 }
 0x4a0   :  { %v806_v1 = vrot.slane %v793_v49, 4  ;;  %v802_v43 = vrot.slane %v801_v9, 2  ;;  %v989_v15 = vsel %vm536_vm1, %v964_v28, %v960_v17 }
 0x4a1   :  { %v765_v51 = vpop.permute.xlu0 %764 }
 0x4a2   :  { %v794_v60 = vmul.f32 %v765_v51, %v1779_v53  ;;  %v807_v12 = vadd.f32 %v806_v1, %v793_v49  ;;  %v968_v8 = vrot.slane %v765_v51, %v1817_v11  ;;  %v803_v4 = vadd.f32 %v802_v43, %v801_v9 }
 0x4a4   :  { %v812_v6 = vrot.slane %v794_v60, 4  ;;  %v808_v37 = vrot.slane %v807_v12, 2  ;;  %v990_v25 = vsel %vm538_vm2, %v968_v8, %v989_v15  ;;  %v804_v39 = vrot.slane %v803_v4, 1 }
 0x4a5   :  { %v770_v2 = vpop.permute.xlu0 %769 }
 0x4a6   :  { %v795_v3 = vmul.f32 %v770_v2, %v1785_v54  ;;  %v813_v36 = vadd.f32 %v812_v6, %v794_v60  ;;  %v972_v61 = vrot.slane %v770_v2, %v1817_v11  ;;  %v805_v1 = vadd.f32 %v804_v39, %v803_v4 }
 0x4a8   :  { %v818_v7 = vrot.slane %v795_v3, 4  ;;  %v814_v54 = vrot.slane %v813_v36, 2  ;;  %v991_v31 = vsel %vm540_vm3, %v972_v61, %v990_v25 }
 0x4a9   :  { %v775_v13 = vpop.permute.xlu0 %774 }
 0x4aa   :  { %v796_v0 = vmul.f32 %v775_v13, %v1787_v55  ;;  %v819_v14 = vadd.f32 %v818_v7, %v795_v3  ;;  %v809_v55 = vadd.f32 %v808_v37, %v807_v12  ;;  %v976_v24 = vrot.slane %v775_v13, %v1817_v11 }
 0x4ab   :  { %v815_v18 = vadd.f32 %v814_v54, %v813_v36 }
 0x4ac   :  { %v824_v52 = vrot.slane %v796_v0, 4  ;;  %v820_v50 = vrot.slane %v819_v14, 2  ;;  %v810_v30 = vrot.slane %v809_v55, 1  ;;  %v992_v33 = vsel %vm542_vm4, %v976_v24, %v991_v31 }
 0x4ad   :  { %v780_v38 = vpop.permute.xlu0 %779  ;;  %v816_v40 = vrot.slane %v815_v18, 1 }
 0x4ae   :  { %v825_v53 = vadd.f32 %v824_v52, %v796_v0  ;;  %v797_v16 = vmul.f32 %v780_v38, %v1791_v56  ;;  %v980_v26 = vrot.slane %v780_v38, %v1817_v11  ;;  %v821_v19 = vadd.f32 %v820_v50, %v819_v14 }
 0x4af   :  { %v811_v49 = vadd.f32 %v810_v30, %v809_v55 }
 0x4b0   :  { %v830_v10 = vrot.slane %v797_v16, 4  ;;  %v826_v23 = vrot.slane %v825_v53, 2  ;;  %v993_v22 = vsel %vm544_vm5, %v980_v26, %v992_v33  ;;  %v822_v42 = vrot.slane %v821_v19, 1 }
 0x4b1   :  { %v785_v62 = vpop.permute.xlu0 %784  ;;  %v879_v6 = vsel %vm536_vm1, %v811_v49, %v805_v1 }
 0x4b2   :  { %v831_v63 = vadd.f32 %v830_v10, %v797_v16  ;;  %v798_v56 = vmul.f32 %v785_v62, %v1793_v57  ;;  %v984_v20 = vrot.slane %v785_v62, %v1817_v11  ;;  %v827_v32 = vadd.f32 %v826_v23, %v825_v53 }
 0x4b3   :  { %v823_v2 = vadd.f32 %v822_v42, %v821_v19 }
 0x4b4   :  { %v832_v27 = vrot.slane %v831_v63, 2  ;;  %v836_v29 = vrot.slane %v798_v56, 4  ;;  %v994_v46 = vsel %vm546_vm6, %v984_v20, %v993_v22  ;;  %v828_v47 = vrot.slane %v827_v32, 1 }
 0x4b5   :  { %v790_v21 = vpop.permute.xlu0 %789 }
 0x4b6   :  { %v833_v34 = vadd.f32 %v832_v27, %v831_v63  ;;  %v837_v57 = vadd.f32 %v836_v29, %v798_v56  ;;  %v799_v35 = vmul.f32 %v790_v21, %v1797_v58  ;;  %v988_v41 = vrot.slane %v790_v21, %v1817_v11 }
 0x4b7   :  { %v817_v58 = vadd.f32 %v816_v40, %v815_v18  ;;  %v829_v11 = vadd.f32 %v828_v47, %v827_v32 }
 0x4b8   :  { %v838_v44 = vrot.slane %v837_v57, 2  ;;  %v842_v45 = vrot.slane %v799_v35, 4  ;;  %v995_v48 = vsel %vm548_vm7, %v988_v41, %v994_v46  ;;  %v834_v51 = vrot.slane %v833_v34, 1 }
 0x4b9   :  { %997 = vst.msk [vmem:[#allocation16] sm:$0xff] %vm551_vm8, %v995_v48  ;;  %v880_v13 = vsel %vm538_vm2, %v817_v58, %v879_v6 }
 0x4ba   :  { %v839_v59 = vadd.f32 %v838_v44, %v837_v57  ;;  %v843_v60 = vadd.f32 %v842_v45, %v799_v35  ;;  %v835_v7 = vadd.f32 %v834_v51, %v833_v34  ;;  %v881_v9 = vsel %vm540_vm3, %v823_v2, %v880_v13 }
 0x4bb   :  { %v882_v14 = vsel %vm542_vm4, %v829_v11, %v881_v9 }
 0x4bc   :  { %v840_v3 = vrot.slane %v839_v59, 1  ;;  %v844_v5 = vrot.slane %v843_v60, 2  ;;  %v883_v37 = vsel %vm544_vm5, %v835_v7, %v882_v14 }
 0x4be   :  { %v845_v12 = vadd.f32 %v844_v5, %v843_v60  ;;  %v841_v0 = vadd.f32 %v840_v3, %v839_v59 }
 0x4c0   :  { %v846_v36 = vrot.slane %v845_v12, 1  ;;  %v884_v38 = vsel %vm546_vm6, %v841_v0, %v883_v37 }
 0x4c2   :  { %v847_v52 = vadd.f32 %v846_v36, %v845_v12 }
 0x4c4   :  { %v885_v28 = vsel %vm548_vm7, %v847_v52, %v884_v38 }
 0x4c5   :  { %1205 = vmatmul.mubr.f32.vlgmr.msra.gmra.mrb[2].mxu0 %v885_v28 }
 0x4c6   :  { %1541 = shalt.err (!%p1538_p12)
}
 0x4c7   :  { %s1542_s18 = scalar_lea.hbm %s1986_s8, 128 }
 0x4c8   :  { %p1543_p13 = scmp.ne.s32.totalorder %s1986_s8, %s1542_s18  ;;  %p1546_p0 = scmp.lt.u32.totalorder %s1542_s18, %s1986_s8 }
 0x4ca   :  { %p1548_p1 = pnand %p1546_p0, %p1543_p13 }
 0x4cc   :  { %1551 = shalt.err (!%p1548_p1)
}
 0x4cd   :  { %1008 = dma.vmem_to_hbm [thread:$0]  %s1006_s13, 128, %s1986_s8, [#allocation4]   ;;  %v1034_v53 = vld [vmem:[#allocation14] ss:$0 sm:$0xff] }
 0x4ce   :  { %s1604_s24 = smov [#allocation17]  }
 0x4cf   :  { %s1015_s0 = sshll.u32 %s1604_s24, 4  ;;  %s1016_s0 = int_to_ptr.vmem [resolvable:$true] %s1015_s0 }
 0x4d0   :  { %s1552_s4 = scalar_lea.vmem %s1016_s0, 128  ;;  %p1557_p3 = scmp.lt.s32.totalorder %s1016_s0, %s1016_s0 }
 0x4d1   :  { %p1553_p2 = scmp.ne.s32.totalorder %s1016_s0, %s1552_s4  ;;  %p1558_p4 = scmp.lt.s32.totalorder %s1552_s4, %s1552_s4 }
 0x4d3   :  { %p1559_p5 = por %p1558_p4, %p1557_p3 }
 0x4d5   :  { %p1560_p6 = pnand %p1559_p5, %p1553_p2 }
 0x598   :  { %v953_v16 = vpop.f32.mrb[2].mxu0 }
 0x599   :  { %v954_v43 = vadd.f32 %v1034_v53, %v953_v16  ;;  %v1206_v54 = vpop.f32.mrb[3].mxu0 }
 0x59b   :  { %998 = vst [vmem:[#allocation17] sm:$0xff] %v954_v43 }
 0x59c   :  { %1563 = shalt.err (!%p1560_p6)
}
 0x59d   :  { %s1564_s30 = scalar_lea.hbm %s1987_s9, 128 }
 0x59e   :  { %p1565_p7 = scmp.ne.s32.totalorder %s1987_s9, %s1564_s30  ;;  %p1568_p8 = scmp.lt.u32.totalorder %s1564_s30, %s1987_s9 }
 0x5a0   :  { %p1570_p9 = pnand %p1568_p8, %p1565_p7 }
 0x5a2   :  { %1573 = shalt.err (!%p1570_p9)
}
 0x5a3   :  { %1018 = dma.vmem_to_hbm [thread:$0]  %s1016_s0, 128, %s1987_s9, [#allocation18]  }
 0x5a4   :  { %1584 = dma.done.wait [#allocation4], 128  }
 0x5a5   :  { %1585 = vsyncadd [#allocation4], 4294967168 }
 0x5a6   :  { %1586 = dma.done.wait [#allocation18], 128  }
 0x5a7   :  { %1587 = vsyncadd [#allocation18], 4294967168 }
 0x5a8   :  { %1025 = vsyncpa [#allocation3], 1 }
 0x5a9   :  { %1026 = vsyncpa [#allocation6], 1 }
 0x5aa   :  { %1027 = vsyncpa [#allocation9], 1 }
 0x5ab   :  { %1028 = vsyncpa [#allocation12], 1 }
 0x5ac   :  { %1029 = vsyncpa [#allocation15], 1 }
 0x5ad   :  { %1030 = vsyncpa [#allocation4], 1 }
 0x5ae   :  { %1031 = vsyncpa [#allocation18], 1 }

</bundles_post_ra>
